<compile_context>
chip_gen: v6e
topology: v6e:2x2x1
jax: 0.10.0
libtpu: 0.0.40
codegen_flags: <defaults>
</compile_context>

<pallas_src>
import functools

import jax
import jax.numpy as jnp
from jax import lax
from jax.experimental import pallas as pl
from jax.experimental.pallas import tpu as pltpu


class Graph:
    """Minimal stand-in for the PyTorch Graph container."""

    def __init__(self, x, edge_index):
        self.x = x                    # (B, C, N, 1)  NCHW, float32
        self.edge_index = edge_index  # (2, B, N, K)  int32: [0]=neighbor j, [1]=center i


def _round_up(a, b):
    return ((a + b - 1) // b) * b


_VMEM_LIMIT = 32 * 1024 * 1024   # explicit scoped-VMEM cap; safe on v5e/v6e (128 MiB) and v7x (64 MiB)
_NODE_TILE = 2048                # node tile (lane axis); 2048-4096 per review, v7x-safe live VMEM
_NSPLIT = 2                      # parallel grid axis of pass 1 (uses both v7x TensorCores)


# ----------------------------------------------------------------------------
# Pass 1: edge-conv + per-node K-max / K-min of the raw conv output
#         + per-channel sum / sum-of-squares (training-mode BN statistics).
# ----------------------------------------------------------------------------
def _stats_kernel(xc_ref, xj_ref, w1_ref, w2_ref,
                  cmax_ref, cmin_ref, sum_ref, sq_ref):
    @pl.when(pl.program_id(1) == 0)
    def _():
        sum_ref[...] = jnp.zeros_like(sum_ref)
        sq_ref[...] = jnp.zeros_like(sq_ref)

    w1 = w1_ref[...]                                           # (C, C) f32
    w2 = w2_ref[...]
    xc = xc_ref[...].astype(jnp.float32)                       # upcast once; f32 VPU math (v5e-friendly)
    hi = jnp.dot(w1, xc, preferred_element_type=jnp.float32)   # (C, T), shared across k

    k_nbrs = xj_ref.shape[0]
    c_out, t = hi.shape
    init = (jnp.zeros((c_out, t), jnp.float32),                # sum_k h
            jnp.zeros((c_out, t), jnp.float32),                # sum_k h^2
            jnp.full((c_out, t), -jnp.inf, jnp.float32),       # max_k h
            jnp.full((c_out, t), jnp.inf, jnp.float32))        # min_k h

    def body(k, carry):
        s, ss, cmx, cmn = carry
        xj = xj_ref[k].astype(jnp.float32)                     # leading-axis view: no relayout
        h = hi + jnp.dot(w2, xj, preferred_element_type=jnp.float32)
        return (s + h, ss + h * h, jnp.maximum(cmx, h), jnp.minimum(cmn, h))

    s, ss, cmx, cmn = lax.fori_loop(0, k_nbrs, body, init, unroll=True)

    cmax_ref[...] = cmx
    cmin_ref[...] = cmn
    # Single cross-lane (XLU) reduction per tile instead of 2*K per tile.
    sum_ref[...] += jnp.sum(s, axis=1, keepdims=True).reshape(sum_ref.shape)
    sq_ref[...] += jnp.sum(ss, axis=1, keepdims=True).reshape(sq_ref.shape)


# ----------------------------------------------------------------------------
# Pass 2: folded BN affine + ReLU + residual (tiny, (C, B*N) elementwise).
#   max_k relu(a*h_k + b) == relu(a * max_k h_k + b) for a >= 0 (min_k for a < 0).
# ----------------------------------------------------------------------------
def _apply_kernel(cmax_ref, cmin_ref, xres_ref, scale_ref, shift_ref, o_ref):
    scale = scale_ref[...]                                     # (C, 1)
    shift = shift_ref[...]
    pooled = jnp.where(scale >= 0.0, cmax_ref[...], cmin_ref[...])
    act = jnp.maximum(pooled * scale + shift, 0.0)
    o_ref[...] = (act + xres_ref[...].astype(jnp.float32)).astype(o_ref.dtype)


# ----------------------------------------------------------------------------
# One ResGraphConv block on channel-major features xs: (C, B*N) float32.
# ----------------------------------------------------------------------------
@functools.partial(jax.jit, static_argnames=("act_dtype",))
def _resgraphconv_block(xs, flat_i, flat_j, params, *, act_dtype=jnp.bfloat16):
    C, BN = xs.shape
    K = flat_j.shape[0]

    # NOTE: dropping the conv bias and zero-column node padding are valid ONLY because
    # training-mode BatchNorm over all B*N*K edges immediately follows (the bias cancels
    # exactly in the mean subtraction; zero columns contribute 0 to the sums).
    w1, w2, _bias, gamma, beta = params
    w1pT = (w1 - w2).T.astype(jnp.float32)   # fold (x_j - x_i): h = (w1-w2)^T x_i + w2^T x_j
    w2T = w2.T.astype(jnp.float32)

    # bf16-stream the gathered conv inputs (dominant HBM term); residual stays f32.
    xs_act = xs.astype(act_dtype)
    x_c = jnp.take(xs_act, flat_i, axis=1, mode="clip")                           # (C, BN)
    x_j = jax.vmap(lambda idx: jnp.take(xs_act, idx, axis=1, mode="clip"))(flat_j)  # (K, C, BN)
    # TODO(synk): in-kernel gather (resident xs + scalar-prefetched idx) would remove this
    # K-fold HBM materialization entirely when C*BN fits VMEM.

    T = min(_NODE_TILE, _round_up(BN, 128))
    BNp = _round_up(BN, _NSPLIT * T)
    steps = BNp // (_NSPLIT * T)
    pad = BNp - BN
    x_res = xs
    if pad:
        x_c = jnp.pad(x_c, ((0, 0), (0, pad)))
        x_j = jnp.pad(x_j, ((0, 0), (0, 0), (0, pad)))
        x_res = jnp.pad(x_res, ((0, 0), (0, pad)))

    tile2 = pl.BlockSpec((C, T), lambda p, i: (0, p * steps + i))
    xj_spec = pl.BlockSpec((K, C, T), lambda p, i: (0, 0, p * steps + i))
    w_spec = pl.BlockSpec((C, C), lambda p, i: (0, 0))
    stat_spec = pl.BlockSpec((1, C, 1), lambda p, i: (p, 0, 0))

    # Pass 1: edge-conv + K-max/K-min + BN sums.  ("parallel", "arbitrary") grid with
    # per-core partial accumulators so both v7x TensorCores share the dominant bytes.
    cmax, cmin, psum, psq = pl.pallas_call(
        _stats_kernel,
        grid=(_NSPLIT, steps),
        out_shape=(jax.ShapeDtypeStruct((C, BNp), jnp.float32),
                   jax.ShapeDtypeStruct((C, BNp), jnp.float32),
                   jax.ShapeDtypeStruct((_NSPLIT, C, 1), jnp.float32),
                   jax.ShapeDtypeStruct((_NSPLIT, C, 1), jnp.float32)),
        in_specs=[tile2, xj_spec, w_spec, w_spec],
        out_specs=(tile2, tile2, stat_spec, stat_spec),
        compiler_params=pltpu.CompilerParams(
            dimension_semantics=("parallel", "arbitrary"),
            vmem_limit_bytes=_VMEM_LIMIT),
    )(x_c, x_j, w1pT, w2T)

    # BN finalize (tiny JAX glue): reduce core-partials, one-pass variance (f32 + clamp;
    # a shifted/Welford accumulation would be safer for extreme |mean|/std ratios),
    # fold gamma/beta into a single per-channel scale & shift.
    s = jnp.sum(psum, axis=0).reshape(C, 1)
    ss = jnp.sum(psq, axis=0).reshape(C, 1)
    m = jnp.float32(BN * K)
    mean = s / m
    var = jnp.maximum(ss / m - mean * mean, 0.0)
    inv = lax.rsqrt(var + 1e-5)
    scale = gamma.reshape(C, 1) * inv
    shift = beta.reshape(C, 1) - mean * scale

    # Pass 2: affine + ReLU + residual on (C, BN) only (x_j is NOT re-read).
    tile1 = pl.BlockSpec((C, T), lambda i: (0, i))
    vec1 = pl.BlockSpec((C, 1), lambda i: (0, 0))
    out = pl.pallas_call(
        _apply_kernel,
        grid=(BNp // T,),
        out_shape=jax.ShapeDtypeStruct((C, BNp), jnp.float32),
        in_specs=[tile1, tile1, tile1, vec1, vec1],
        out_specs=tile1,
        compiler_params=pltpu.CompilerParams(
            dimension_semantics=("parallel",),
            vmem_limit_bytes=_VMEM_LIMIT),
    )(cmax, cmin, x_res, scale, shift)

    return out[:, :BN]                      # drop node padding; stay channel-major


def resgcn_forward(graph, params_list, act_dtype=jnp.bfloat16):
    """ResGCN.forward: sequentially apply residual EdgeConv blocks, updating graph.x."""
    x = graph.x                                   # (B, C, N, 1) NCHW float32
    B, C, N, _ = x.shape
    BN = B * N
    idx_j = graph.edge_index[0]                   # (B, N, K) neighbors
    idx_i = graph.edge_index[1][:, :, 0]          # (B, N)    centers (gathered ONCE)
    # NOTE: assumes the K center indices of a node are identical (standard knn-graph
    # construction); per-edge-varying centers would need a per-edge center gather.
    K = idx_j.shape[-1]
    base = (jnp.arange(B, dtype=idx_j.dtype) * N)[:, None]
    flat_i = (idx_i + base).reshape(BN)                                        # (BN,)
    flat_j = jnp.transpose(idx_j + base[:, :, None], (2, 0, 1)).reshape(K, BN)  # (K, BN)

    # Channel-major once for the whole stack (no per-block layout round trips).
    xs = jnp.transpose(x[..., 0], (1, 0, 2)).reshape(C, BN)
    for params in params_list:
        xs = _resgraphconv_block(xs, flat_i, flat_j, params, act_dtype=act_dtype)
    out = jnp.transpose(xs.reshape(C, B, N), (1, 0, 2))[..., None]             # back to NCHW
    return Graph(out, graph.edge_index)


# ----------------------------------------------------------------------------
# Pure-JAX reference (PyTorch semantics).  `act_dtype` optionally quantizes the
# gathered conv inputs to mirror the kernel's activation streaming.
# ----------------------------------------------------------------------------
def _ref_block(x, edge_index, params, act_dtype):
    B, C, N, _ = x.shape
    xs = jnp.transpose(x[..., 0], (0, 2, 1))                  # (B, N, C)
    xq = xs.astype(act_dtype).astype(jnp.float32)
    gather = jax.vmap(lambda xb, ib: xb[ib])
    x_j = gather(xq, edge_index[0])                           # (B, N, K, C)
    x_i = gather(xq, edge_index[1])
    w1, w2, b, gamma, beta = params
    W = jnp.concatenate([w1, w2], axis=0)                     # (2C, C)
    e = jnp.concatenate([x_i, x_j - x_i], axis=-1)            # (B, N, K, 2C)
    h = jnp.einsum('bnkc,cd->bnkd', e, W) + b
    mean = jnp.mean(h, axis=(0, 1, 2))
    var = jnp.mean((h - mean) ** 2, axis=(0, 1, 2))
    hn = (h - mean) / jnp.sqrt(var + 1e-5) * gamma + beta
    hn = jnp.maximum(hn, 0.0)
    pooled = jnp.max(hn, axis=2)                              # (B, N, C)
    out = pooled + xs                                         # residual stays full precision
    return jnp.transpose(out, (0, 2, 1))[..., None]


def _ref_forward(graph, params_list, act_dtype=jnp.float32):
    x = graph.x
    for params in params_list:
        x = _ref_block(x, graph.edge_index, params, act_dtype)
    return x


# ----------------------------------------------------------------------------
# Deterministic parameter / input construction and smoke test.
# ----------------------------------------------------------------------------
def _init_params(key, in_channels, blocks):
    params_list = []
    for blk in range(blocks):
        kw, kb = jax.random.split(jax.random.fold_in(key, blk))
        fan_in = 2 * in_channels
        W = jax.random.normal(kw, (2 * in_channels, in_channels), jnp.float32)
        W = W / jnp.sqrt(jnp.float32(fan_in))
        b = 0.01 * jax.random.normal(kb, (in_channels,), jnp.float32)
        gamma = jnp.ones((in_channels,), jnp.float32)
        beta = jnp.zeros((in_channels,), jnp.float32)
        params_list.append((W[:in_channels], W[in_channels:], b, gamma, beta))
    return params_list


if __name__ == "__main__":
    B, C, N, K = 2, 16, 16, 8      # batch, in_channels, nodes, neighbors
    BLOCKS = 2

    key = jax.random.PRNGKey(0)
    kx, ke, kp = jax.random.split(key, 3)

    x = jax.random.normal(kx, (B, C, N, 1), jnp.float32)              # NCHW
    idx_j = jax.random.randint(ke, (B, N, K), 0, N, dtype=jnp.int32)  # neighbors
    idx_i = jnp.broadcast_to(jnp.arange(N, dtype=jnp.int32)[None, :, None], (B, N, K))
    edge_index = jnp.stack([idx_j, idx_i], axis=0)                    # (2, B, N, K)

    params_list = _init_params(kp, C, BLOCKS)
    graph = Graph(x, edge_index)

    # knn-style graphs: the K center indices of each node must be identical.
    assert bool(jnp.all(edge_index[1] == edge_index[1][:, :, :1])), "non-constant centers"

    # Full-precision mode: exact module semantics vs. f32 reference.
    out_f32 = jax.block_until_ready(
        resgcn_forward(graph, params_list, act_dtype=jnp.float32).x)
    ref_f32 = jax.block_until_ready(_ref_forward(graph, params_list, jnp.float32))
    assert out_f32.shape == (B, C, N, 1) and out_f32.dtype == jnp.float32
    assert bool(jnp.allclose(out_f32, ref_f32, atol=1e-3, rtol=1e-3)), "f32 mismatch"

    # Default bf16-streamed perf mode vs. a reference that quantizes the gathered conv
    # inputs identically (all other math f32 in both).
    out_bf16 = jax.block_until_ready(resgcn_forward(graph, params_list).x)
    ref_bf16 = jax.block_until_ready(_ref_forward(graph, params_list, jnp.bfloat16))
    assert out_bf16.shape == (B, C, N, 1) and out_bf16.dtype == jnp.float32
    assert bool(jnp.allclose(out_bf16, ref_bf16, atol=2e-3, rtol=2e-3)), "bf16 mismatch"

    print("KERNEL_OK")
</pallas_src>

<mosaic_0001>
module attributes {stable_mosaic.version = 11 : i64} {
  func.func @_apply_kernel(%arg0: i32, %arg1: memref<16x128xf32, #tpu.memory_space<vmem>>, %arg2: memref<16x128xf32, #tpu.memory_space<vmem>>, %arg3: memref<16x128xf32, #tpu.memory_space<vmem>>, %arg4: memref<16x1xf32, #tpu.memory_space<vmem>>, %arg5: memref<16x1xf32, #tpu.memory_space<vmem>>, %arg6: memref<16x128xf32, #tpu.memory_space<vmem>>) attributes {dimension_semantics = [#tpu.dimension_semantics<parallel>], iteration_bounds = array<i64: 2>, scalar_prefetch = 0 : i64, scratch_operands = 0 : i64, tpu.core_type = #tpu.core_type<tc>, window_params = [{transform_indices = @transform_0, window_bounds = array<i64: 16, 128>}, {transform_indices = @transform_1, window_bounds = array<i64: 16, 128>}, {transform_indices = @transform_2, window_bounds = array<i64: 16, 128>}, {pipeline_mode = #tpu.pipeline_mode<synchronous>, transform_indices = @transform_3, window_bounds = array<i64: 16, 1>}, {pipeline_mode = #tpu.pipeline_mode<synchronous>, transform_indices = @transform_4, window_bounds = array<i64: 16, 1>}, {transform_indices = @transform_5, window_bounds = array<i64: 16, 128>}]} {
    %c0 = arith.constant 0 : index
    %c0_0 = arith.constant 0 : index
    %0 = vector.load %arg4[%c0, %c0_0] : memref<16x1xf32, #tpu.memory_space<vmem>>, vector<16x1xf32>
    %c0_1 = arith.constant 0 : index
    %c0_2 = arith.constant 0 : index
    %1 = vector.load %arg5[%c0_1, %c0_2] : memref<16x1xf32, #tpu.memory_space<vmem>>, vector<16x1xf32>
    %cst = arith.constant 0.000000e+00 : f32
    %2 = vector.broadcast %cst : f32 to vector<16x1xf32>
    %3 = arith.cmpf oge, %0, %2 : vector<16x1xf32>
    %c0_3 = arith.constant 0 : index
    %c0_4 = arith.constant 0 : index
    %4 = vector.load %arg1[%c0_3, %c0_4] : memref<16x128xf32, #tpu.memory_space<vmem>>, vector<16x128xf32>
    %c0_5 = arith.constant 0 : index
    %c0_6 = arith.constant 0 : index
    %5 = vector.load %arg2[%c0_5, %c0_6] : memref<16x128xf32, #tpu.memory_space<vmem>>, vector<16x128xf32>
    %6 = vector.shape_cast %3 : vector<16x1xi1> to vector<16x1xi1>
    %7 = vector.broadcast %6 : vector<16x1xi1> to vector<16x128xi1>
    %8 = arith.select %7, %4, %5 : vector<16x128xi1>, vector<16x128xf32>
    %9 = vector.broadcast %0 : vector<16x1xf32> to vector<16x128xf32>
    %10 = arith.mulf %8, %9 : vector<16x128xf32>
    %11 = vector.broadcast %1 : vector<16x1xf32> to vector<16x128xf32>
    %12 = arith.addf %10, %11 : vector<16x128xf32>
    %cst_7 = arith.constant 0.000000e+00 : f32
    %13 = vector.broadcast %cst_7 : f32 to vector<16x128xf32>
    %14 = arith.maximumf %12, %13 : vector<16x128xf32>
    %c0_8 = arith.constant 0 : index
    %c0_9 = arith.constant 0 : index
    %15 = vector.load %arg3[%c0_8, %c0_9] : memref<16x128xf32, #tpu.memory_space<vmem>>, vector<16x128xf32>
    %16 = arith.addf %14, %15 : vector<16x128xf32>
    %c0_10 = arith.constant 0 : index
    %c0_11 = arith.constant 0 : index
    %17 = vector.load %arg6[%c0_10, %c0_11] : memref<16x128xf32, #tpu.memory_space<vmem>>, vector<16x128xf32>
    tpu.vector_store %arg6[%c0_10, %c0_11], %16 {strides = array<i32>} : memref<16x128xf32, #tpu.memory_space<vmem>>, vector<16x128xf32>,
    return
  }
  func.func @transform_0(%arg0: i32) -> (i32, i32) {
    %c0_i32 = arith.constant 0 : i32
    %c0_i32_0 = arith.constant 0 : i32
    return %c0_i32, %arg0 : i32, i32
  }
  func.func @transform_1(%arg0: i32) -> (i32, i32) {
    %c0_i32 = arith.constant 0 : i32
    %c0_i32_0 = arith.constant 0 : i32
    return %c0_i32, %arg0 : i32, i32
  }
  func.func @transform_2(%arg0: i32) -> (i32, i32) {
    %c0_i32 = arith.constant 0 : i32
    %c0_i32_0 = arith.constant 0 : i32
    return %c0_i32, %arg0 : i32, i32
  }
  func.func @transform_3(%arg0: i32) -> (i32, i32) {
    %c0_i32 = arith.constant 0 : i32
    %c0_i32_0 = arith.constant 0 : i32
    %c0_i32_1 = arith.constant 0 : i32
    return %c0_i32, %c0_i32_0 : i32, i32
  }
  func.func @transform_4(%arg0: i32) -> (i32, i32) {
    %c0_i32 = arith.constant 0 : i32
    %c0_i32_0 = arith.constant 0 : i32
    %c0_i32_1 = arith.constant 0 : i32
    return %c0_i32, %c0_i32_0 : i32, i32
  }
  func.func @transform_5(%arg0: i32) -> (i32, i32) {
    %c0_i32 = arith.constant 0 : i32
    %c0_i32_0 = arith.constant 0 : i32
    return %c0_i32, %arg0 : i32, i32
  }
}

module attributes {stable_mosaic.version = 11 : i64} {
  func.func @_stats_kernel(%arg0: i32, %arg1: i32, %arg2: memref<16x128xf32, #tpu.memory_space<vmem>>, %arg3: memref<8x16x128xf32, #tpu.memory_space<vmem>>, %arg4: memref<16x16xf32, #tpu.memory_space<vmem>>, %arg5: memref<16x16xf32, #tpu.memory_space<vmem>>, %arg6: memref<16x128xf32, #tpu.memory_space<vmem>>, %arg7: memref<16x128xf32, #tpu.memory_space<vmem>>, %arg8: memref<1x16x1xf32, #tpu.memory_space<vmem>>, %arg9: memref<1x16x1xf32, #tpu.memory_space<vmem>>) attributes {dimension_semantics = [#tpu.dimension_semantics<parallel>, #tpu.dimension_semantics<arbitrary>], iteration_bounds = array<i64: 2, 1>, scalar_prefetch = 0 : i64, scratch_operands = 0 : i64, tpu.core_type = #tpu.core_type<tc>, window_params = [{transform_indices = @transform_0, window_bounds = array<i64: 16, 128>}, {transform_indices = @transform_1, window_bounds = array<i64: 8, 16, 128>}, {pipeline_mode = #tpu.pipeline_mode<synchronous>, transform_indices = @transform_2, window_bounds = array<i64: 16, 16>}, {pipeline_mode = #tpu.pipeline_mode<synchronous>, transform_indices = @transform_3, window_bounds = array<i64: 16, 16>}, {transform_indices = @transform_4, window_bounds = array<i64: 16, 128>}, {transform_indices = @transform_5, window_bounds = array<i64: 16, 128>}, {transform_indices = @transform_6, window_bounds = array<i64: 1, 16, 1>}, {transform_indices = @transform_7, window_bounds = array<i64: 1, 16, 1>}]} {
    %c0_i32 = arith.constant 0 : i32
    %0 = arith.cmpi eq, %arg1, %c0_i32 : i32
    %1 = arith.extui %0 : i1 to i32
    %c0_i32_0 = arith.constant 0 : i32
    %2 = arith.cmpi ne, %1, %c0_i32_0 : i32
    scf.if %2 {
      %cst_53 = arith.constant 0.000000e+00 : f32
      %105 = vector.broadcast %cst_53 : f32 to vector<1x16x1xf32>
      %c0_54 = arith.constant 0 : index
      %c0_55 = arith.constant 0 : index
      %c0_56 = arith.constant 0 : index
      %106 = vector.load %arg8[%c0_54, %c0_55, %c0_56] : memref<1x16x1xf32, #tpu.memory_space<vmem>>, vector<1x16x1xf32>
      tpu.vector_store %arg8[%c0_54, %c0_55, %c0_56], %105 {strides = array<i32>} : memref<1x16x1xf32, #tpu.memory_space<vmem>>, vector<1x16x1xf32>,
      %cst_57 = arith.constant 0.000000e+00 : f32
      %107 = vector.broadcast %cst_57 : f32 to vector<1x16x1xf32>
      %c0_58 = arith.constant 0 : index
      %c0_59 = arith.constant 0 : index
      %c0_60 = arith.constant 0 : index
      %108 = vector.load %arg9[%c0_58, %c0_59, %c0_60] : memref<1x16x1xf32, #tpu.memory_space<vmem>>, vector<1x16x1xf32>
      tpu.vector_store %arg9[%c0_58, %c0_59, %c0_60], %107 {strides = array<i32>} : memref<1x16x1xf32, #tpu.memory_space<vmem>>, vector<1x16x1xf32>,
    } else {
    }
    %c0 = arith.constant 0 : index
    %c0_1 = arith.constant 0 : index
    %3 = vector.load %arg4[%c0, %c0_1] : memref<16x16xf32, #tpu.memory_space<vmem>>, vector<16x16xf32>
    %c0_2 = arith.constant 0 : index
    %c0_3 = arith.constant 0 : index
    %4 = vector.load %arg5[%c0_2, %c0_3] : memref<16x16xf32, #tpu.memory_space<vmem>>, vector<16x16xf32>
    %c0_4 = arith.constant 0 : index
    %c0_5 = arith.constant 0 : index
    %5 = vector.load %arg2[%c0_4, %c0_5] : memref<16x128xf32, #tpu.memory_space<vmem>>, vector<16x128xf32>
    %cst = arith.constant dense<0.000000e+00> : vector<16x128xf32>
    %6 = tpu.matmul %3, %5, %cst {dimension_numbers = #tpu.dot_dimension_numbers<[1], [0], [0], [1], [0, 0, 1, 1], [], []>} : vector<16x16xf32>, vector<16x128xf32>, vector<16x128xf32> -> vector<16x128xf32>
    %cst_6 = arith.constant 0.000000e+00 : f32
    %7 = vector.broadcast %cst_6 : f32 to vector<16x128xf32>
    %cst_7 = arith.constant 0.000000e+00 : f32
    %8 = vector.broadcast %cst_7 : f32 to vector<16x128xf32>
    %cst_8 = arith.constant 0xFF800000 : f32
    %9 = vector.broadcast %cst_8 : f32 to vector<16x128xf32>
    %cst_9 = arith.constant 0x7F800000 : f32
    %10 = vector.broadcast %cst_9 : f32 to vector<16x128xf32>
    %c0_i32_10 = arith.constant 0 : i32
    %11 = arith.index_cast %c0_i32_10 : i32 to index
    %c0_11 = arith.constant 0 : index
    %c0_12 = arith.constant 0 : index
    %12 = vector.load %arg3[%11, %c0_11, %c0_12] : memref<8x16x128xf32, #tpu.memory_space<vmem>>, vector<1x16x128xf32>
    %13 = vector.shape_cast %12 : vector<1x16x128xf32> to vector<16x128xf32>
    %cst_13 = arith.constant dense<0.000000e+00> : vector<16x128xf32>
    %14 = tpu.matmul %4, %13, %cst_13 {dimension_numbers = #tpu.dot_dimension_numbers<[1], [0], [0], [1], [0, 0, 1, 1], [], []>} : vector<16x16xf32>, vector<16x128xf32>, vector<16x128xf32> -> vector<16x128xf32>
    %15 = arith.addf %6, %14 : vector<16x128xf32>
    %16 = arith.addf %7, %15 : vector<16x128xf32>
    %17 = arith.mulf %15, %15 : vector<16x128xf32>
    %18 = arith.addf %8, %17 : vector<16x128xf32>
    %19 = arith.maximumf %9, %15 : vector<16x128xf32>
    %20 = arith.minimumf %10, %15 : vector<16x128xf32>
    %c1_i32 = arith.constant 1 : i32
    %21 = arith.index_cast %c1_i32 : i32 to index
    %c0_14 = arith.constant 0 : index
    %c0_15 = arith.constant 0 : index
    %22 = vector.load %arg3[%21, %c0_14, %c0_15] : memref<8x16x128xf32, #tpu.memory_space<vmem>>, vector<1x16x128xf32>
    %23 = vector.shape_cast %22 : vector<1x16x128xf32> to vector<16x128xf32>
    %cst_16 = arith.constant dense<0.000000e+00> : vector<16x128xf32>
    %24 = tpu.matmul %4, %23, %cst_16 {dimension_numbers = #tpu.dot_dimension_numbers<[1], [0], [0], [1], [0, 0, 1, 1], [], []>} : vector<16x16xf32>, vector<16x128xf32>, vector<16x128xf32> -> vector<16x128xf32>
    %25 = arith.addf %6, %24 : vector<16x128xf32>
    %26 = arith.addf %16, %25 : vector<16x128xf32>
    %27 = arith.mulf %25, %25 : vector<16x128xf32>
    %28 = arith.addf %18, %27 : vector<16x128xf32>
    %29 = arith.maximumf %19, %25 : vector<16x128xf32>
    %30 = arith.minimumf %20, %25 : vector<16x128xf32>
    %c2_i32 = arith.constant 2 : i32
    %31 = arith.index_cast %c2_i32 : i32 to index
    %c0_17 = arith.constant 0 : index
    %c0_18 = arith.constant 0 : index
    %32 = vector.load %arg3[%31, %c0_17, %c0_18] : memref<8x16x128xf32, #tpu.memory_space<vmem>>, vector<1x16x128xf32>
    %33 = vector.shape_cast %32 : vector<1x16x128xf32> to vector<16x128xf32>
    %cst_19 = arith.constant dense<0.000000e+00> : vector<16x128xf32>
    %34 = tpu.matmul %4, %33, %cst_19 {dimension_numbers = #tpu.dot_dimension_numbers<[1], [0], [0], [1], [0, 0, 1, 1], [], []>} : vector<16x16xf32>, vector<16x128xf32>, vector<16x128xf32> -> vector<16x128xf32>
    %35 = arith.addf %6, %34 : vector<16x128xf32>
    %36 = arith.addf %26, %35 : vector<16x128xf32>
    %37 = arith.mulf %35, %35 : vector<16x128xf32>
    %38 = arith.addf %28, %37 : vector<16x128xf32>
    %39 = arith.maximumf %29, %35 : vector<16x128xf32>
    %40 = arith.minimumf %30, %35 : vector<16x128xf32>
    %c3_i32 = arith.constant 3 : i32
    %41 = arith.index_cast %c3_i32 : i32 to index
    %c0_20 = arith.constant 0 : index
    %c0_21 = arith.constant 0 : index
    %42 = vector.load %arg3[%41, %c0_20, %c0_21] : memref<8x16x128xf32, #tpu.memory_space<vmem>>, vector<1x16x128xf32>
    %43 = vector.shape_cast %42 : vector<1x16x128xf32> to vector<16x128xf32>
    %cst_22 = arith.constant dense<0.000000e+00> : vector<16x128xf32>
    %44 = tpu.matmul %4, %43, %cst_22 {dimension_numbers = #tpu.dot_dimension_numbers<[1], [0], [0], [1], [0, 0, 1, 1], [], []>} : vector<16x16xf32>, vector<16x128xf32>, vector<16x128xf32> -> vector<16x128xf32>
    %45 = arith.addf %6, %44 : vector<16x128xf32>
    %46 = arith.addf %36, %45 : vector<16x128xf32>
    %47 = arith.mulf %45, %45 : vector<16x128xf32>
    %48 = arith.addf %38, %47 : vector<16x128xf32>
    %49 = arith.maximumf %39, %45 : vector<16x128xf32>
    %50 = arith.minimumf %40, %45 : vector<16x128xf32>
    %c4_i32 = arith.constant 4 : i32
    %51 = arith.index_cast %c4_i32 : i32 to index
    %c0_23 = arith.constant 0 : index
    %c0_24 = arith.constant 0 : index
    %52 = vector.load %arg3[%51, %c0_23, %c0_24] : memref<8x16x128xf32, #tpu.memory_space<vmem>>, vector<1x16x128xf32>
    %53 = vector.shape_cast %52 : vector<1x16x128xf32> to vector<16x128xf32>
    %cst_25 = arith.constant dense<0.000000e+00> : vector<16x128xf32>
    %54 = tpu.matmul %4, %53, %cst_25 {dimension_numbers = #tpu.dot_dimension_numbers<[1], [0], [0], [1], [0, 0, 1, 1], [], []>} : vector<16x16xf32>, vector<16x128xf32>, vector<16x128xf32> -> vector<16x128xf32>
    %55 = arith.addf %6, %54 : vector<16x128xf32>
    %56 = arith.addf %46, %55 : vector<16x128xf32>
    %57 = arith.mulf %55, %55 : vector<16x128xf32>
    %58 = arith.addf %48, %57 : vector<16x128xf32>
    %59 = arith.maximumf %49, %55 : vector<16x128xf32>
    %60 = arith.minimumf %50, %55 : vector<16x128xf32>
    %c5_i32 = arith.constant 5 : i32
    %61 = arith.index_cast %c5_i32 : i32 to index
    %c0_26 = arith.constant 0 : index
    %c0_27 = arith.constant 0 : index
    %62 = vector.load %arg3[%61, %c0_26, %c0_27] : memref<8x16x128xf32, #tpu.memory_space<vmem>>, vector<1x16x128xf32>
    %63 = vector.shape_cast %62 : vector<1x16x128xf32> to vector<16x128xf32>
    %cst_28 = arith.constant dense<0.000000e+00> : vector<16x128xf32>
    %64 = tpu.matmul %4, %63, %cst_28 {dimension_numbers = #tpu.dot_dimension_numbers<[1], [0], [0], [1], [0, 0, 1, 1], [], []>} : vector<16x16xf32>, vector<16x128xf32>, vector<16x128xf32> -> vector<16x128xf32>
    %65 = arith.addf %6, %64 : vector<16x128xf32>
    %66 = arith.addf %56, %65 : vector<16x128xf32>
    %67 = arith.mulf %65, %65 : vector<16x128xf32>
    %68 = arith.addf %58, %67 : vector<16x128xf32>
    %69 = arith.maximumf %59, %65 : vector<16x128xf32>
    %70 = arith.minimumf %60, %65 : vector<16x128xf32>
    %c6_i32 = arith.constant 6 : i32
    %71 = arith.index_cast %c6_i32 : i32 to index
    %c0_29 = arith.constant 0 : index
    %c0_30 = arith.constant 0 : index
    %72 = vector.load %arg3[%71, %c0_29, %c0_30] : memref<8x16x128xf32, #tpu.memory_space<vmem>>, vector<1x16x128xf32>
    %73 = vector.shape_cast %72 : vector<1x16x128xf32> to vector<16x128xf32>
    %cst_31 = arith.constant dense<0.000000e+00> : vector<16x128xf32>
    %74 = tpu.matmul %4, %73, %cst_31 {dimension_numbers = #tpu.dot_dimension_numbers<[1], [0], [0], [1], [0, 0, 1, 1], [], []>} : vector<16x16xf32>, vector<16x128xf32>, vector<16x128xf32> -> vector<16x128xf32>
    %75 = arith.addf %6, %74 : vector<16x128xf32>
    %76 = arith.addf %66, %75 : vector<16x128xf32>
    %77 = arith.mulf %75, %75 : vector<16x128xf32>
    %78 = arith.addf %68, %77 : vector<16x128xf32>
    %79 = arith.maximumf %69, %75 : vector<16x128xf32>
    %80 = arith.minimumf %70, %75 : vector<16x128xf32>
    %c7_i32 = arith.constant 7 : i32
    %81 = arith.index_cast %c7_i32 : i32 to index
    %c0_32 = arith.constant 0 : index
    %c0_33 = arith.constant 0 : index
    %82 = vector.load %arg3[%81, %c0_32, %c0_33] : memref<8x16x128xf32, #tpu.memory_space<vmem>>, vector<1x16x128xf32>
    %83 = vector.shape_cast %82 : vector<1x16x128xf32> to vector<16x128xf32>
    %cst_34 = arith.constant dense<0.000000e+00> : vector<16x128xf32>
    %84 = tpu.matmul %4, %83, %cst_34 {dimension_numbers = #tpu.dot_dimension_numbers<[1], [0], [0], [1], [0, 0, 1, 1], [], []>} : vector<16x16xf32>, vector<16x128xf32>, vector<16x128xf32> -> vector<16x128xf32>
    %85 = arith.addf %6, %84 : vector<16x128xf32>
    %86 = arith.addf %76, %85 : vector<16x128xf32>
    %87 = arith.mulf %85, %85 : vector<16x128xf32>
    %88 = arith.addf %78, %87 : vector<16x128xf32>
    %89 = arith.maximumf %79, %85 : vector<16x128xf32>
    %90 = arith.minimumf %80, %85 : vector<16x128xf32>
    %c8_i32 = arith.constant 8 : i32
    %c0_35 = arith.constant 0 : index
    %c0_36 = arith.constant 0 : index
    %91 = vector.load %arg6[%c0_35, %c0_36] : memref<16x128xf32, #tpu.memory_space<vmem>>, vector<16x128xf32>
    tpu.vector_store %arg6[%c0_35, %c0_36], %89 {strides = array<i32>} : memref<16x128xf32, #tpu.memory_space<vmem>>, vector<16x128xf32>,
    %c0_37 = arith.constant 0 : index
    %c0_38 = arith.constant 0 : index
    %92 = vector.load %arg7[%c0_37, %c0_38] : memref<16x128xf32, #tpu.memory_space<vmem>>, vector<16x128xf32>
    tpu.vector_store %arg7[%c0_37, %c0_38], %90 {strides = array<i32>} : memref<16x128xf32, #tpu.memory_space<vmem>>, vector<16x128xf32>,
    %c0_39 = arith.constant 0 : index
    %c0_40 = arith.constant 0 : index
    %c0_41 = arith.constant 0 : index
    %93 = vector.load %arg8[%c0_39, %c0_40, %c0_41] : memref<1x16x1xf32, #tpu.memory_space<vmem>>, vector<1x16x1xf32>
    %cst_42 = arith.constant dense<0.000000e+00> : vector<16xf32>
    %94 = vector.multi_reduction <add>, %86, %cst_42 [1] : vector<16x128xf32> to vector<16xf32>
    %95 = vector.shape_cast %94 : vector<16xf32> to vector<16x1xf32>
    %96 = vector.shape_cast %95 : vector<16x1xf32> to vector<1x16x1xf32>
    %97 = arith.addf %93, %96 : vector<1x16x1xf32>
    %c0_43 = arith.constant 0 : index
    %c0_44 = arith.constant 0 : index
    %c0_45 = arith.constant 0 : index
    %98 = vector.load %arg8[%c0_43, %c0_44, %c0_45] : memref<1x16x1xf32, #tpu.memory_space<vmem>>, vector<1x16x1xf32>
    tpu.vector_store %arg8[%c0_43, %c0_44, %c0_45], %97 {strides = array<i32>} : memref<1x16x1xf32, #tpu.memory_space<vmem>>, vector<1x16x1xf32>,
    %c0_46 = arith.constant 0 : index
    %c0_47 = arith.constant 0 : index
    %c0_48 = arith.constant 0 : index
    %99 = vector.load %arg9[%c0_46, %c0_47, %c0_48] : memref<1x16x1xf32, #tpu.memory_space<vmem>>, vector<1x16x1xf32>
    %cst_49 = arith.constant dense<0.000000e+00> : vector<16xf32>
    %100 = vector.multi_reduction <add>, %88, %cst_49 [1] : vector<16x128xf32> to vector<16xf32>
    %101 = vector.shape_cast %100 : vector<16xf32> to vector<16x1xf32>
    %102 = vector.shape_cast %101 : vector<16x1xf32> to vector<1x16x1xf32>
    %103 = arith.addf %99, %102 : vector<1x16x1xf32>
    %c0_50 = arith.constant 0 : index
    %c0_51 = arith.constant 0 : index
    %c0_52 = arith.constant 0 : index
    %104 = vector.load %arg9[%c0_50, %c0_51, %c0_52] : memref<1x16x1xf32, #tpu.memory_space<vmem>>, vector<1x16x1xf32>
    tpu.vector_store %arg9[%c0_50, %c0_51, %c0_52], %103 {strides = array<i32>} : memref<1x16x1xf32, #tpu.memory_space<vmem>>, vector<1x16x1xf32>,
    return
  }
  func.func @transform_0(%arg0: i32, %arg1: i32) -> (i32, i32) {
    %c1_i32 = arith.constant 1 : i32
    %0 = arith.muli %arg0, %c1_i32 : i32
    %1 = arith.addi %0, %arg1 : i32
    %c0_i32 = arith.constant 0 : i32
    %c0_i32_0 = arith.constant 0 : i32
    return %c0_i32, %1 : i32, i32
  }
  func.func @transform_1(%arg0: i32, %arg1: i32) -> (i32, i32, i32) {
    %c1_i32 = arith.constant 1 : i32
    %0 = arith.muli %arg0, %c1_i32 : i32
    %1 = arith.addi %0, %arg1 : i32
    %c0_i32 = arith.constant 0 : i32
    %c0_i32_0 = arith.constant 0 : i32
    %c0_i32_1 = arith.constant 0 : i32
    return %c0_i32, %c0_i32_0, %1 : i32, i32, i32
  }
  func.func @transform_2(%arg0: i32, %arg1: i32) -> (i32, i32) {
    %c0_i32 = arith.constant 0 : i32
    %c0_i32_0 = arith.constant 0 : i32
    %c0_i32_1 = arith.constant 0 : i32
    return %c0_i32, %c0_i32_0 : i32, i32
  }
  func.func @transform_3(%arg0: i32, %arg1: i32) -> (i32, i32) {
    %c0_i32 = arith.constant 0 : i32
    %c0_i32_0 = arith.constant 0 : i32
    %c0_i32_1 = arith.constant 0 : i32
    return %c0_i32, %c0_i32_0 : i32, i32
  }
  func.func @transform_4(%arg0: i32, %arg1: i32) -> (i32, i32) {
    %c1_i32 = arith.constant 1 : i32
    %0 = arith.muli %arg0, %c1_i32 : i32
    %1 = arith.addi %0, %arg1 : i32
    %c0_i32 = arith.constant 0 : i32
    %c0_i32_0 = arith.constant 0 : i32
    return %c0_i32, %1 : i32, i32
  }
  func.func @transform_5(%arg0: i32, %arg1: i32) -> (i32, i32) {
    %c1_i32 = arith.constant 1 : i32
    %0 = arith.muli %arg0, %c1_i32 : i32
    %1 = arith.addi %0, %arg1 : i32
    %c0_i32 = arith.constant 0 : i32
    %c0_i32_0 = arith.constant 0 : i32
    return %c0_i32, %1 : i32, i32
  }
  func.func @transform_6(%arg0: i32, %arg1: i32) -> (i32, i32, i32) {
    %c0_i32 = arith.constant 0 : i32
    %c0_i32_0 = arith.constant 0 : i32
    %c0_i32_1 = arith.constant 0 : i32
    return %arg0, %c0_i32, %c0_i32_0 : i32, i32, i32
  }
  func.func @transform_7(%arg0: i32, %arg1: i32) -> (i32, i32, i32) {
    %c0_i32 = arith.constant 0 : i32
    %c0_i32_0 = arith.constant 0 : i32
    %c0_i32_1 = arith.constant 0 : i32
    return %arg0, %c0_i32, %c0_i32_0 : i32, i32, i32
  }
}

</mosaic_0001>

<bundles_post_ra>
// kernel: _resgraphconv_block.3
= control target key start
LH: loop header
LB: loop body
LE: loop exit
PB: predicated region body
PF: predicated region fallthrough
CT: control target
= control target key end

     0   :  { %s669_s18 = smov 0   ;;  %s671_s19 = smov 0   ;;  %s761_s0 = inlined_call_operand.vmem [shape: f32[16,256], index: 0, kind: input, shape index: {}]   ;;  %s762_s1 = inlined_call_operand.vmem [shape: f32[16,256], index: 1, kind: input, shape index: {}]   ;;  %s763_s2 = inlined_call_operand.vmem [shape: f32[16,256], index: 2, kind: input, shape index: {}]   ;;  %s764_s3 = inlined_call_operand.vmem [shape: f32[16,1], index: 3, kind: input, shape index: {}]   ;;  %s765_s4 = inlined_call_operand.vmem [shape: f32[16,1], index: 4, kind: input, shape index: {}]   ;;  %s766_s5 = inlined_call_operand.vmem [shape: f32[16,256], index: 5, kind: output, shape index: {}]  }
   0x1   :  { %s673_s20 = smov 0  }
   0x2 LB: > { %s568_s21 = sadd.s32 4294967295, %s636_s20   ;;  %s686_s22 = sadd.s32 1, %s636_s20   ;;  %s636_s20 = sphi %s673_s20, %s771_s20   ;;  %s632_s19 = sphi %s671_s19, %s770_s19   ;;  %s628_s18 = sphi %s669_s18, %s769_s18  }
   0x3   : > { %s19_s23 = ssub.s32 %s636_s20, %s686_s22  ;;  %s22_s24 = sadd.s32 1, %s632_s19 }
   0x4   : > { %p20_p0 = scmp.eq.s32.totalorder %s19_s23, 0  ;;  %p29_p1 = scmp.ne.s32.totalorder %s632_s19, %s628_s18 }
   0x5   : > { %p30_p2 = scmp.eq.s32.totalorder %s636_s20, 0  ;;  %p153_p3 = scmp.eq.s32.totalorder %s568_s21, 1 }
   0x6   : > { %s697_s25 = scalar_select %p20_p0, %s632_s19, %s22_s24  }
   0x7   : > { %p699_p4 = por %p30_p2, %p29_p1  ;;  %p703_p5 = por %p153_p3, %p29_p1 }
   0x8   : > { %p571_p6 = scmp.ge.s32.totalorder %s636_s20, 2 }
   0xa   : > { %181 = sbr.rel (%p571_p6) target bundleno = 30 (0x1e), region = 24 }
   0xf   : > { %184 = sbr.rel (!%p699_p4) target bundleno = 20 (0x14), region = 28  ;;  %s186_s28 = sand.u32 (%p699_p4), 1, %s632_s19  }
  0x10   : > { %s573_s29 = sshll.u32 (%p699_p4), %s636_s20, 3  ;;  %s572_s30 = sshll.u32 (%p699_p4), %s186_s28, 4 }
  0x11   : > { %s190_s8 = scalar_lea.vmem (%p699_p4), %s761_s0, %s573_s29  ;;  %s188_s9 = scalar_lea.vmem (%p699_p4), [#allocation2], %s572_s30 }
  0x12   : > { %v221_v0 = vld [vmem:[%s190_s8] sm:$0xff] (%p699_p4)  ;;  %v223_v1 = vld [vmem:[%s190_s8 + $0x10] sm:$0xff] (%p699_p4) }
  0x13   : > { %222 = vst [vmem:[%s188_s9] sm:$0xff] (%p699_p4), %v221_v0  ;;  %224 = vst [vmem:[%s188_s9 + $0x8] sm:$0xff] (%p699_p4), %v223_v1 }
  0x14 PF: > { %230 = sbr.rel (!%p699_p4) target bundleno = 25 (0x19), region = 66  ;;  %s232_s10 = sand.u32 (%p699_p4), 1, %s632_s19  }
  0x15   : > { %s575_s11 = sshll.u32 (%p699_p4), %s636_s20, 3  ;;  %s574_s12 = sshll.u32 (%p699_p4), %s232_s10, 4 }
  0x16   : > { %s236_s15 = scalar_lea.vmem (%p699_p4), %s762_s1, %s575_s11  ;;  %s234_s16 = scalar_lea.vmem (%p699_p4), [#allocation3], %s574_s12 }
  0x17   : > { %v267_v2 = vld [vmem:[%s236_s15] sm:$0xff] (%p699_p4)  ;;  %v269_v3 = vld [vmem:[%s236_s15 + $0x10] sm:$0xff] (%p699_p4) }
  0x18   : > { %268 = vst [vmem:[%s234_s16] sm:$0xff] (%p699_p4), %v267_v2  ;;  %270 = vst [vmem:[%s234_s16 + $0x8] sm:$0xff] (%p699_p4), %v269_v3 }
  0x19 PF: > { %276 = sbr.rel (!%p699_p4) target bundleno = 30 (0x1e), region = 104  ;;  %s278_s17 = sand.u32 (%p699_p4), 1, %s632_s19  }
  0x1a   : > { %s577_s23 = sshll.u32 (%p699_p4), %s636_s20, 3  ;;  %s576_s24 = sshll.u32 (%p699_p4), %s278_s17, 4 }
  0x1b   : > { %s282_s30 = scalar_lea.vmem (%p699_p4), %s763_s2, %s577_s23  ;;  %s280_s6 = scalar_lea.vmem (%p699_p4), [#allocation4], %s576_s24 }
  0x1c   : > { %v313_v4 = vld [vmem:[%s282_s30] sm:$0xff] (%p699_p4)  ;;  %v315_v5 = vld [vmem:[%s282_s30 + $0x10] sm:$0xff] (%p699_p4) }
  0x1d   : > { %314 = vst [vmem:[%s280_s6] sm:$0xff] (%p699_p4), %v313_v4  ;;  %316 = vst [vmem:[%s280_s6 + $0x8] sm:$0xff] (%p699_p4), %v315_v5 }
  0x1e PF: > { %p578_p7 = scmp.ge.s32.totalorder %s636_s20, 1  ;;  %p321_p8 = scmp.lt.s32.totalorder %s636_s20, 3 }
  0x20   : > { %p322_p9 = pnand %p578_p7, %p321_p8 }
  0x21   : > { %s328_s14 = sand.u32 (!%p322_p9), 1, %s628_s18  }
  0x22   : > { %325 = sbr.rel (%p322_p9) target bundleno = 189 (0xbd), region = 142  ;;  %s579_s15 = sshll.u32 (!%p322_p9), %s328_s14, 4 }
  0x23   : > { %s330_s16 = scalar_lea.vmem (!%p322_p9), [#allocation2], %s579_s15  ;;  %s337_s17 = scalar_lea.vmem (!%p322_p9), [#allocation3], %s579_s15 }
  0x24   : > { %s344_s18 = scalar_lea.vmem (!%p322_p9), [#allocation4], %s579_s15  ;;  %s375_s23 = scalar_lea.vmem (!%p322_p9), [#allocation5], %s579_s15 }
  0x27   : > { %v376_v6 = vld [vmem:[%s764_s3] sm:$0xff]  ;;  %v377_v7 = vld [vmem:[%s764_s3 + $0x8] sm:$0xff]  ;;  %v638_v8 = vmov 0   ;;  %s584_s24 = sshll.u32 (%p703_p5), %s568_s21, 3 }
  0x28   : > { %613 = vset.pattern.permute.xlu1 %v638_v8  ;;  %612 = vset.pattern.permute.xlu0 %v638_v8  ;;  %vm380_vm0 = vcmp.ge.f32.partialorder %v376_v6, 0.0  ;;  %vm381_vm1 = vcmp.ge.f32.partialorder %v377_v7, 0.0  ;;  %v379_v11 = vld [vmem:[%s765_s4 + $0x8] sm:$0xff]  ;;  %v378_v12 = vld [vmem:[%s765_s4] sm:$0xff]  ;;  %s438_s30 = scalar_lea.vmem (%p703_p5), %s766_s5, %s584_s24 }
  0x29   : > { %400 = vperm.xlu1 %613, %v376_v6   ;;  %v386_v9 = vsel %vm380_vm0, 1, %v638_v8  ;;  %v387_v10 = vsel %vm381_vm1, 1, %v638_v8  ;;  %v382_v15 = vld [vmem:[%s330_s16] sm:$0xff]  ;;  %v383_v18 = vld [vmem:[%s330_s16 + $0x8] sm:$0xff] }
  0x2a   : > { %389 = vperm.xlu0 %612, %v386_v9   ;;  %v384_v16 = vld [vmem:[%s337_s17] sm:$0xff]  ;;  %v385_v19 = vld [vmem:[%s337_s17 + $0x8] sm:$0xff] }
  0x2b   : > { %v425_v29 = vld [vmem:[%s344_s18 + $0x8] sm:$0xff]  ;;  %v424_v30 = vld [vmem:[%s344_s18] sm:$0xff] }
  0x2d   : > { %405 = vperm.xlu1 %613, %v377_v7  }
  0x2e   : > { %392 = vperm.xlu0 %612, %v387_v10  }
  0x31   : > { %417 = vperm.xlu1 %613, %v379_v11  }
  0x32   : > { %412 = vperm.xlu0 %612, %v378_v12  }
  0xa4   : > { %v401_v13 = vpop.permute.xlu1 %400 }
  0xa5   : > { %v390_v14 = vpop.permute.xlu0 %389 }
  0xa6   : > { %vm394_vm2 = vcmp.eq.s32.totalorder %v390_v14, 1 }
  0xa7   : > { %v396_v20 = vsel %vm394_vm2, %v382_v15, %v384_v16 }
  0xa8   : > { %v406_v17 = vpop.permute.xlu1 %405  ;;  %v408_v25 = vmul.f32 %v401_v13, %v396_v20 }
  0xa9   : > { %v393_v21 = vpop.permute.xlu0 %392 }
  0xaa   : > { %vm395_vm3 = vcmp.eq.s32.totalorder %v393_v21, 1 }
  0xab   : > { %v397_v22 = vsel %vm395_vm3, %v383_v18, %v385_v19 }
  0xac   : > { %v418_v23 = vpop.permute.xlu1 %417  ;;  %v409_v24 = vmul.f32 %v406_v17, %v397_v22 }
  0xad   : > { %v413_v26 = vpop.permute.xlu0 %412 }
  0xae   : > { %v421_v27 = vadd.f32 %v418_v23, %v409_v24  ;;  %v420_v28 = vadd.f32 %v413_v26, %v408_v25 }
  0xb0   : > { %v423_v31 = vmax.f32 %v421_v27, 0.0  ;;  %v422_v32 = vmax.f32 %v420_v28, 0.0  ;;  %436 = sbr.rel (!%p703_p5) target bundleno = 189 (0xbd), region = 158 }
  0xb2   : > { %v427_v33 = vadd.f32 %v425_v29, %v423_v31  ;;  %v426_v34 = vadd.f32 %v424_v30, %v422_v32 }
  0xb4   : > { %429 = vst [vmem:[%s375_s23 + $0x8] sm:$0xff] %v427_v33  ;;  %428 = vst [vmem:[%s375_s23] sm:$0xff] %v426_v34 }
  0xbb   : > { %v469_v35 = vld [vmem:[%s375_s23] sm:$0xff]  ;;  %v471_v36 = vld [vmem:[%s375_s23 + $0x8] sm:$0xff] }
  0xbc   : > { %470 = vst [vmem:[%s438_s30] sm:$0xff] %v469_v35  ;;  %472 = vst [vmem:[%s438_s30 + $0x10] sm:$0xff] %v471_v36 }
  0xbd PF: > { %p12_p10 = scmp.ge.s32.totalorder %s686_s22, 4   ;;  %s769_s18 = smov %s632_s19 }
  0xbe   : > { %s770_s19 = smov %s697_s25  ;;  %s771_s20 = smov %s686_s22 }
  0xbf   :  { %14 = sbr.rel (!%p12_p10) target bundleno = 2 (0x2), region = 243 }

// kernel: _resgraphconv_block.2
= control target key start
LH: loop header
LB: loop body
LE: loop exit
PB: predicated region body
PF: predicated region fallthrough
CT: control target
= control target key end

     0   :  { %s1880_s24 = smov 0   ;;  %s1882_s25 = smov 0   ;;  %s2119_s0 = inlined_call_operand.vmem [shape: f32[16,256], index: 0, kind: input, shape index: {}]   ;;  %s2120_s1 = inlined_call_operand.vmem [shape: f32[8,16,256], index: 1, kind: input, shape index: {}]   ;;  %s2121_s2 = inlined_call_operand.vmem [shape: f32[16,16], index: 2, kind: input, shape index: {}]   ;;  %s2122_s3 = inlined_call_operand.vmem [shape: f32[16,16], index: 3, kind: input, shape index: {}]   ;;  %s2123_s4 = inlined_call_operand.vmem [shape: f32[16,256], index: 4, kind: output, shape index: {0}]   ;;  %s2124_s5 = inlined_call_operand.vmem [shape: f32[16,256], index: 5, kind: output, shape index: {1}]   ;;  %s2125_s6 = inlined_call_operand.vmem [shape: f32[2,16,1], index: 6, kind: output, shape index: {2}]   ;;  %s2126_s7 = inlined_call_operand.vmem [shape: f32[2,16,1], index: 7, kind: output, shape index: {3}]  }
   0x1   :  { %s1884_s26 = smov 0   ;;  %s1886_s27 = smov 0  }
   0x2   :  { %s1888_s28 = smov 0  }
   0x3 LB: > { %s30_s29 = sadd.s32 1, %s1833_s27  ;;  %s1602_s30 = sadd.s32 4294967295, %s1837_s28   ;;  %s1837_s28 = sphi %s1888_s28, %s18_s28   ;;  %s1833_s27 = sphi %s1886_s27, %s2132_s27   ;;  %s1829_s26 = sphi %s1884_s26, %s2131_s26   ;;  %s1825_s25 = sphi %s1882_s25, %s2130_s25   ;;  %s1821_s24 = sphi %s1880_s24, %s2129_s24  }
   0x4   : > { %p32_p0 = scmp.ge.s32.totalorder %s30_s29, 2  ;;  %p46_p1 = scmp.ne.s32.totalorder %s1825_s25, %s1821_s24 }
   0x5   : > { %p47_p2 = scmp.eq.s32.totalorder %s1837_s28, 0  ;;  %p148_p4 = scmp.eq.s32.totalorder %s1602_s30, 1 }
   0x6   : > { %s2134_s29 = smov (%p32_p0, %s30_s29), 0  ;;  %s39_s10 = sadd.s32 1, %s1825_s25 }
   0x7   : > { %p1912_p3 = por %p47_p2, %p46_p1  ;;  %s36_s9 = ssub.s32 %s1833_s27, %s2134_s29 }
   0x8   : > { %p37_p5 = scmp.eq.s32.totalorder %s36_s9, 0  ;;  %p1919_p6 = por %p148_p4, %p46_p1 }
   0x9   : > { %p1605_p7 = scmp.ge.s32.totalorder %s1837_s28, 2 }
   0xa   : > { %s1924_s12 = scalar_select %p37_p5, %s1825_s25, %s39_s10  }
   0xb   : > { %256 = sbr.rel (%p1605_p7) target bundleno = 33 (0x21), region = 24 }
  0x10   : > { %259 = sbr.rel (!%p1912_p3) target bundleno = 21 (0x15), region = 28  ;;  %s261_s13 = sand.u32 (%p1912_p3), 1, %s1825_s25  }
  0x11   : > { %s1607_s14 = sshll.u32 (%p1912_p3), %s1833_s27, 3  ;;  %s1606_s15 = sshll.u32 (%p1912_p3), %s261_s13, 4 }
  0x12   : > { %s266_s18 = scalar_lea.vmem (%p1912_p3), %s2119_s0, %s1607_s14  ;;  %s263_s19 = scalar_lea.vmem (%p1912_p3), [#allocation2], %s1606_s15 }
  0x13   : > { %v297_v0 = vld [vmem:[%s266_s18] sm:$0xff] (%p1912_p3)  ;;  %v299_v1 = vld [vmem:[%s266_s18 + $0x10] sm:$0xff] (%p1912_p3) }
  0x14   : > { %298 = vst [vmem:[%s263_s19] sm:$0xff] (%p1912_p3), %v297_v0  ;;  %300 = vst [vmem:[%s263_s19 + $0x8] sm:$0xff] (%p1912_p3), %v299_v1 }
  0x15 PF: > { %306 = sbr.rel (!%p1912_p3) target bundleno = 33 (0x21), region = 66  ;;  %s308_s20 = sand.u32 (%p1912_p3), 1, %s1825_s25  }
  0x16   : > { %s1609_s21 = sshll.u32 (%p1912_p3), %s1833_s27, 3  ;;  %s1608_s22 = sshll.u32 (%p1912_p3), %s308_s20, 7 }
  0x17   : > { %s1941_s9 = scalar_lea.vmem (%p1912_p3), %s2120_s1, %s1609_s21  ;;  %s310_s8 = scalar_lea.vmem (%p1912_p3), [#allocation3], %s1608_s22 }
  0x18   : > { %v372_v2 = vld [vmem:[%s1941_s9] sm:$0xff] (%p1912_p3)  ;;  %v374_v3 = vld [vmem:[%s1941_s9 + $0x10] sm:$0xff] (%p1912_p3) }
  0x19   : > { %v376_v4 = vld [vmem:[%s1941_s9 + $0x20] sm:$0xff] (%p1912_p3)  ;;  %373 = vst [vmem:[%s310_s8] sm:$0xff] (%p1912_p3), %v372_v2  ;;  %375 = vst [vmem:[%s310_s8 + $0x8] sm:$0xff] (%p1912_p3), %v374_v3  ;;  %v378_v5 = vld [vmem:[%s1941_s9 + $0x30] sm:$0xff] (%p1912_p3) }
  0x1a   : > { %377 = vst [vmem:[%s310_s8 + $0x10] sm:$0xff] %v376_v4  ;;  %v380_v6 = vld [vmem:[%s1941_s9 + $0x40] sm:$0xff]  ;;  %v382_v7 = vld [vmem:[%s1941_s9 + $0x50] sm:$0xff]  ;;  %379 = vst [vmem:[%s310_s8 + $0x18] sm:$0xff] %v378_v5 }
  0x1b   : > { %381 = vst [vmem:[%s310_s8 + $0x20] sm:$0xff] %v380_v6  ;;  %383 = vst [vmem:[%s310_s8 + $0x28] sm:$0xff] %v382_v7  ;;  %v384_v8 = vld [vmem:[%s1941_s9 + $0x60] sm:$0xff]  ;;  %v386_v9 = vld [vmem:[%s1941_s9 + $0x70] sm:$0xff] }
  0x1c   : > { %v388_v10 = vld [vmem:[%s1941_s9 + $0x80] sm:$0xff]  ;;  %385 = vst [vmem:[%s310_s8 + $0x30] sm:$0xff] %v384_v8  ;;  %387 = vst [vmem:[%s310_s8 + $0x38] sm:$0xff] %v386_v9  ;;  %v390_v11 = vld [vmem:[%s1941_s9 + $0x90] sm:$0xff] }
  0x1d   : > { %389 = vst [vmem:[%s310_s8 + $0x40] sm:$0xff] %v388_v10  ;;  %v392_v12 = vld [vmem:[%s1941_s9 + $0xa0] sm:$0xff]  ;;  %v394_v13 = vld [vmem:[%s1941_s9 + $0xb0] sm:$0xff]  ;;  %391 = vst [vmem:[%s310_s8 + $0x48] sm:$0xff] %v390_v11 }
  0x1e   : > { %393 = vst [vmem:[%s310_s8 + $0x50] sm:$0xff] %v392_v12  ;;  %395 = vst [vmem:[%s310_s8 + $0x58] sm:$0xff] %v394_v13  ;;  %v396_v14 = vld [vmem:[%s1941_s9 + $0xc0] sm:$0xff]  ;;  %v398_v15 = vld [vmem:[%s1941_s9 + $0xd0] sm:$0xff] }
  0x1f   : > { %v400_v16 = vld [vmem:[%s1941_s9 + $0xe0] sm:$0xff]  ;;  %397 = vst [vmem:[%s310_s8 + $0x60] sm:$0xff] %v396_v14  ;;  %399 = vst [vmem:[%s310_s8 + $0x68] sm:$0xff] %v398_v15  ;;  %v402_v17 = vld [vmem:[%s1941_s9 + $0xf0] sm:$0xff] }
  0x20   : > { %401 = vst [vmem:[%s310_s8 + $0x70] sm:$0xff] %v400_v16  ;;  %403 = vst [vmem:[%s310_s8 + $0x78] sm:$0xff] %v402_v17 }
  0x21 PF: > { %p1610_p8 = scmp.ge.s32.totalorder %s1837_s28, 1  ;;  %p408_p9 = scmp.lt.s32.totalorder %s1837_s28, 3 }
  0x23   : > { %p409_p10 = pnand %p1610_p8, %p408_p9 }
  0x24   : > { %s415_s10 = sand.u32 (!%p409_p10), 1, %s1821_s24   ;;  %p474_p11 = scmp.lt.s32.totalorder (!%p409_p10), %s1829_s26, 1 }
  0x25   : > { %412 = sbr.rel (%p409_p10) target bundleno = 423 (0x1a7), region = 104  ;;  %s1970_s17 = sshll.u32 (!%p409_p10), %s415_s10, 4 }
  0x26   : > { %s1612_s18 = sshll.u32 (!%p409_p10), %s415_s10, 7  ;;  %s417_s24 = scalar_lea.vmem (!%p409_p10), [#allocation2], %s1970_s17 }
  0x27   : > { %s1976_s19 = scalar_lea.vmem (!%p409_p10), [#allocation3], %s1612_s18  ;;  %s2062_s14 = scalar_lea.vmem (!%p409_p10), [#allocation4], %s1970_s17 }
  0x28   : > { %s2066_s15 = scalar_lea.vmem (!%p409_p10), [#allocation5], %s1970_s17 }
  0x2a   : > { %v493_v18 = vld [vmem:[%s2121_s2] sm:$0xff]  ;;  %vm499_vm0 = vcmask 130048   ;;  %v498_v20 = vld [vmem:[%s417_s24 + $0x8] sm:$0xff]  ;;  %v1623_v28 = vld [vmem:[%s1976_s19 + $0x10] sm:$0xff]  ;;  %s2025_s30 = scalar_select %p474_p11, %s1829_s26, 1  ;;  %vm488_vm1 = vcmask 7168  }
  0x2b   : > { %v1968_v19 = vld [vmem:[%s2122_s3] sm:$0xff]  ;;  %1699 = vmatprep.mubr.msk.f32.mxu0 %vm499_vm0, %v493_v18  ;;  %v582_v21 = vld [vmem:[%s1976_s19 + $0x8] sm:$0xff]  ;;  %1695 = vmatprep.subr.mxu0 %v498_v20  ;;  %v1624_v26 = vld [vmem:[%s1976_s19 + $0x18] sm:$0xff]  ;;  %v1839_v40 = vmov 0.0  }
  0x2c   : > { %1706 = vmatprep.mubr.msk.f32.mxu1 %vm499_vm0, %v1968_v19  ;;  %v497_v22 = vld [vmem:[%s417_s24] sm:$0xff]  ;;  %1702 = vmatprep.subr.mxu1 %v582_v21  ;;  %v494_v24 = vld [vmem:[%s2121_s2 + $0x8] sm:$0xff]  ;;  %v1632_v30 = vld [vmem:[%s1976_s19 + $0x38] sm:$0xff]  ;;  %s1657_s9 = sshll.u32 %s2025_s30, 4  ;;  %s1653_s24 = sshll.u32 (%p1919_p6), %s1829_s26, 3 }
  0x2d   : > { %v581_v23 = vld [vmem:[%s1976_s19] sm:$0xff]  ;;  %1696 = vmatpush3.msra.mxu0 %v498_v20  ;;  %1703 = vmatpush3.msra.mxu1 %v582_v21  ;;  %v496_v25 = vld [vmem:[%s2122_s3 + $0x8] sm:$0xff]  ;;  %v1631_v32 = vld [vmem:[%s1976_s19 + $0x30] sm:$0xff]  ;;  %s2033_s13 = scalar_lea.vmem %s2125_s6, %s1657_s9  ;;  %s483_s18 = scalar_lea.vmem %s2126_s7, %s1657_s9 }
  0x2e   : > { %1697 = vmatprep.subr.mxu0 %v497_v22  ;;  %1704 = vmatprep.subr.mxu1 %v581_v23  ;;  %v1628_v27 = vld [vmem:[%s1976_s19 + $0x28] sm:$0xff]  ;;  %v1627_v29 = vld [vmem:[%s1976_s19 + $0x20] sm:$0xff]  ;;  %v1640_v34 = vld [vmem:[%s1976_s19 + $0x58] sm:$0xff]  ;;  %489 = vst.msk [vmem:[%s2033_s13] sm:$0xff] %vm488_vm1, %v1839_v40  ;;  %s1350_s21 = scalar_lea.vmem (%p1919_p6), %s2123_s4, %s1653_s24 }
  0x2f   : > { %1698 = vmatpush3.msra.mxu0 %v497_v22  ;;  %1705 = vmatpush3.msra.mxu1 %v581_v23  ;;  %v1636_v31 = vld [vmem:[%s1976_s19 + $0x48] sm:$0xff]  ;;  %v1635_v33 = vld [vmem:[%s1976_s19 + $0x40] sm:$0xff]  ;;  %v1639_v36 = vld [vmem:[%s1976_s19 + $0x50] sm:$0xff]  ;;  %490 = vst.msk [vmem:[%s2033_s13 + $0x8] sm:$0xff] %vm488_vm1, %v1839_v40 }
  0x30   : > { %1700 = vmatmul.mubr.msk.f32.vlgmr.msra.gmra.mxu0 %vm499_vm0, %v494_v24  ;;  %1707 = vmatmul.mubr.msk.f32.vlgmr.msra.gmra.mxu1 %vm499_vm0, %v496_v25  ;;  %v1644_v35 = vld [vmem:[%s1976_s19 + $0x68] sm:$0xff]  ;;  %v1643_v37 = vld [vmem:[%s1976_s19 + $0x60] sm:$0xff]  ;;  %v1648_v38 = vld [vmem:[%s1976_s19 + $0x78] sm:$0xff]  ;;  %491 = vst.msk [vmem:[%s483_s18] sm:$0xff] %vm488_vm1, %v1839_v40 }
  0x31   : > { %1709 = vmatprep.subr.mxu0 %v1624_v26  ;;  %1716 = vmatprep.subr.mxu1 %v1628_v27  ;;  %v1647_v39 = vld [vmem:[%s1976_s19 + $0x70] sm:$0xff]  ;;  %492 = vst.msk [vmem:[%s483_s18 + $0x8] sm:$0xff] %vm488_vm1, %v1839_v40 }
  0x32   : > { %1710 = vmatpush3.msra.mxu0 %v1624_v26  ;;  %1717 = vmatpush3.msra.mxu1 %v1628_v27 }
  0x33   : > { %1711 = vmatprep.subr.mxu0 %v1623_v28  ;;  %1718 = vmatprep.subr.mxu1 %v1627_v29 }
  0x34   : > { %1712 = vmatpush3.msra.mxu0 %v1623_v28  ;;  %1713 = vmatprep.mubr.msk.f32.mxu0 %vm499_vm0, %v1968_v19 }
  0x35   : > { %1719 = vmatpush3.msra.mxu1 %v1627_v29  ;;  %1720 = vmatprep.mubr.msk.f32.mxu1 %vm499_vm0, %v1968_v19 }
  0x36   : > { %1714 = vmatmul.mubr.msk.f32.vlgmr.msra.gmra.mxu0 %vm499_vm0, %v496_v25  ;;  %1721 = vmatmul.mubr.msk.f32.vlgmr.msra.gmra.mxu1 %vm499_vm0, %v496_v25 }
  0x37   : > { %1723 = vmatprep.subr.mxu0 %v1632_v30  ;;  %1730 = vmatprep.subr.mxu1 %v1636_v31 }
  0x38   : > { %1724 = vmatpush3.msra.mxu0 %v1632_v30  ;;  %1731 = vmatpush3.msra.mxu1 %v1636_v31 }
  0x39   : > { %1725 = vmatprep.subr.mxu0 %v1631_v32  ;;  %1732 = vmatprep.subr.mxu1 %v1635_v33 }
  0x3a   : > { %1726 = vmatpush3.msra.mxu0 %v1631_v32  ;;  %1727 = vmatprep.mubr.msk.f32.mxu0 %vm499_vm0, %v1968_v19 }
  0x3b   : > { %1733 = vmatpush3.msra.mxu1 %v1635_v33  ;;  %1734 = vmatprep.mubr.msk.f32.mxu1 %vm499_vm0, %v1968_v19 }
  0x3c   : > { %1728 = vmatmul.mubr.msk.f32.vlgmr.msra.gmra.mxu0 %vm499_vm0, %v496_v25  ;;  %1735 = vmatmul.mubr.msk.f32.vlgmr.msra.gmra.mxu1 %vm499_vm0, %v496_v25 }
  0x3d   : > { %1737 = vmatprep.subr.mxu0 %v1640_v34  ;;  %1744 = vmatprep.subr.mxu1 %v1644_v35 }
  0x3e   : > { %1738 = vmatpush3.msra.mxu0 %v1640_v34  ;;  %1745 = vmatpush3.msra.mxu1 %v1644_v35 }
  0x3f   : > { %1739 = vmatprep.subr.mxu0 %v1639_v36  ;;  %1746 = vmatprep.subr.mxu1 %v1643_v37 }
  0x40   : > { %1740 = vmatpush3.msra.mxu0 %v1639_v36  ;;  %1741 = vmatprep.mubr.msk.f32.mxu0 %vm499_vm0, %v1968_v19 }
  0x41   : > { %1747 = vmatpush3.msra.mxu1 %v1643_v37  ;;  %1748 = vmatprep.mubr.msk.f32.mxu1 %vm499_vm0, %v1968_v19 }
  0x42   : > { %1742 = vmatmul.mubr.msk.f32.vlgmr.msra.gmra.mxu0 %vm499_vm0, %v496_v25  ;;  %1749 = vmatmul.mubr.msk.f32.vlgmr.msra.gmra.mxu1 %vm499_vm0, %v496_v25 }
  0x43   : > { %1751 = vmatprep.subr.mxu0 %v1648_v38  ;;  %1755 = vmatprep.mubr.msk.f32.mxu0 %vm499_vm0, %v1968_v19 }
  0x44   : > { %1752 = vmatpush3.msra.mxu0 %v1648_v38 }
  0x45   : > { %1753 = vmatprep.subr.mxu0 %v1647_v39 }
  0x46   : > { %1754 = vmatpush3.msra.mxu0 %v1647_v39 }
  0x47   : > { %1756 = vmatmul.mubr.msk.f32.vlgmr.msra.gmra.mxu0 %vm499_vm0, %v496_v25 }
  0xf0   : > { %v2041_v41 = vpop.f32.mrf.mxu0  ;;  %v1708_v42 = vpop.f32.mrf.mxu1 }
  0xf1   : > { %v665_v45 = vadd.f32 %v1708_v42, %v2041_v41 }
  0xf2   : > { %v2043_v43 = vpop.f32.mrf.mxu0  ;;  %v655_v44 = vpop.f32.mrf.mxu1 }
  0xf3   : > { %v664_v46 = vadd.f32 %v655_v44, %v2043_v43  ;;  %v669_v51 = vmul.f32 %v665_v45, %v665_v45 }
  0xf5   : > { %v668_v58 = vmul.f32 %v664_v46, %v664_v46 }
  0xf6   : > { %v1715_v47 = vpop.f32.mrf.mxu0  ;;  %v1722_v48 = vpop.f32.mrf.mxu1 }
  0xf7   : > { %v751_v49 = vadd.f32 %v1715_v47, %v2041_v41  ;;  %v841_v50 = vadd.f32 %v1722_v48, %v2041_v41 }
  0xf8   : > { %v741_v52 = vpop.f32.mrf.mxu0  ;;  %v831_v53 = vpop.f32.mrf.mxu1 }
  0xf9   : > { %v753_v54 = vadd.f32 %v751_v49, %v665_v45  ;;  %v755_v55 = vmul.f32 %v751_v49, %v751_v49  ;;  %v759_v56 = vmax.f32 %v665_v45, %v751_v49  ;;  %v761_v57 = vmin.f32 %v665_v45, %v751_v49 }
  0xfa   : > { %v845_v59 = vmul.f32 %v841_v50, %v841_v50  ;;  %v750_v60 = vadd.f32 %v741_v52, %v2043_v43  ;;  %v840_v61 = vadd.f32 %v831_v53, %v2043_v43 }
  0xfb   : > { %v757_v62 = vadd.f32 %v755_v55, %v669_v51  ;;  %v843_v63 = vadd.f32 %v841_v50, %v753_v54  ;;  %v849_v0 = vmax.f32 %v759_v56, %v841_v50  ;;  %v851_v1 = vmin.f32 %v761_v57, %v841_v50 }
  0xfc   : > { %v752_v2 = vadd.f32 %v750_v60, %v664_v46  ;;  %v754_v3 = vmul.f32 %v750_v60, %v750_v60  ;;  %v758_v4 = vmax.f32 %v664_v46, %v750_v60  ;;  %v760_v5 = vmin.f32 %v664_v46, %v750_v60  ;;  %v1729_v6 = vpop.f32.mrf.mxu0  ;;  %v1736_v7 = vpop.f32.mrf.mxu1 }
  0xfd   : > { %v847_v8 = vadd.f32 %v845_v59, %v757_v62  ;;  %v844_v9 = vmul.f32 %v840_v61, %v840_v61  ;;  %v931_v10 = vadd.f32 %v1729_v6, %v2041_v41  ;;  %v1021_v11 = vadd.f32 %v1736_v7, %v2041_v41 }
  0xfe   : > { %v756_v12 = vadd.f32 %v754_v3, %v668_v58  ;;  %v842_v13 = vadd.f32 %v840_v61, %v752_v2  ;;  %v848_v14 = vmax.f32 %v758_v4, %v840_v61  ;;  %v850_v15 = vmin.f32 %v760_v5, %v840_v61  ;;  %v921_v16 = vpop.f32.mrf.mxu0  ;;  %v1011_v17 = vpop.f32.mrf.mxu1 }
  0xff   : > { %v933_v18 = vadd.f32 %v931_v10, %v843_v63  ;;  %v935_v19 = vmul.f32 %v931_v10, %v931_v10  ;;  %v939_v20 = vmax.f32 %v849_v0, %v931_v10  ;;  %v941_v21 = vmin.f32 %v851_v1, %v931_v10 }
 0x100   : > { %v930_v22 = vadd.f32 %v921_v16, %v2043_v43  ;;  %v1020_v23 = vadd.f32 %v1011_v17, %v2043_v43  ;;  %v846_v24 = vadd.f32 %v844_v9, %v756_v12  ;;  %v1025_v35 = vmul.f32 %v1021_v11, %v1021_v11 }
 0x101   : > { %v1029_v25 = vmax.f32 %v939_v20, %v1021_v11  ;;  %v1031_v26 = vmin.f32 %v941_v21, %v1021_v11  ;;  %v1023_v27 = vadd.f32 %v1021_v11, %v933_v18  ;;  %v937_v28 = vadd.f32 %v935_v19, %v847_v8  ;;  %v1306_v20 = vld [vmem:[%s2033_s13] sm:$0xff] }
 0x102   : > { %v934_v29 = vmul.f32 %v930_v22, %v930_v22  ;;  %v938_v30 = vmax.f32 %v848_v14, %v930_v22  ;;  %v940_v31 = vmin.f32 %v850_v15, %v930_v22  ;;  %v1743_v32 = vpop.f32.mrf.mxu0  ;;  %v1750_v33 = vpop.f32.mrf.mxu1  ;;  %v932_v34 = vadd.f32 %v930_v22, %v842_v13 }
 0x103   : > { %v1111_v36 = vadd.f32 %v1743_v32, %v2041_v41  ;;  %v1201_v37 = vadd.f32 %v1750_v33, %v2041_v41  ;;  %v1024_v38 = vmul.f32 %v1020_v23, %v1020_v23  ;;  %v1027_v51 = vadd.f32 %v1025_v35, %v937_v28 }
 0x104   : > { %v1028_v39 = vmax.f32 %v938_v30, %v1020_v23  ;;  %v1030_v42 = vmin.f32 %v940_v31, %v1020_v23  ;;  %v1101_v44 = vpop.f32.mrf.mxu0  ;;  %v1191_v45 = vpop.f32.mrf.mxu1  ;;  %v1022_v46 = vadd.f32 %v1020_v23, %v932_v34  ;;  %v936_v47 = vadd.f32 %v934_v29, %v846_v24  ;;  %v1317_v23 = vld [vmem:[%s483_s18] sm:$0xff]  ;;  %v1307_v24 = vld [vmem:[%s2033_s13 + $0x8] sm:$0xff] }
 0x105   : > { %v1119_v48 = vmax.f32 %v1029_v25, %v1111_v36  ;;  %v1121_v49 = vmin.f32 %v1031_v26, %v1111_v36  ;;  %v1110_v50 = vadd.f32 %v1101_v44, %v2043_v43  ;;  %v1200_v52 = vadd.f32 %v1191_v45, %v2043_v43  ;;  %v1318_v29 = vld [vmem:[%s483_s18 + $0x8] sm:$0xff] }
 0x106   : > { %v1026_v53 = vadd.f32 %v1024_v38, %v936_v47  ;;  %v1113_v54 = vadd.f32 %v1111_v36, %v1023_v27  ;;  %v1115_v55 = vmul.f32 %v1111_v36, %v1111_v36  ;;  %v1205_v14 = vmul.f32 %v1201_v37, %v1201_v37 }
 0x107   : > { %v1209_v56 = vmax.f32 %v1119_v48, %v1201_v37  ;;  %v1211_v57 = vmin.f32 %v1121_v49, %v1201_v37  ;;  %v1118_v58 = vmax.f32 %v1028_v39, %v1110_v50  ;;  %v1120_v59 = vmin.f32 %v1030_v42, %v1110_v50  ;;  %v1757_v60 = vpop.f32.mrf.mxu0 }
 0x108   : > { %v1291_v61 = vadd.f32 %v1757_v60, %v2041_v41  ;;  %v1112_v62 = vadd.f32 %v1110_v50, %v1022_v46  ;;  %v1114_v63 = vmul.f32 %v1110_v50, %v1110_v50  ;;  %v1204_v8 = vmul.f32 %v1200_v52, %v1200_v52 }
 0x109   : > { %v1208_v0 = vmax.f32 %v1118_v58, %v1200_v52  ;;  %v1210_v1 = vmin.f32 %v1120_v59, %v1200_v52  ;;  %v1281_v2 = vpop.f32.mrf.mxu0  ;;  %v1203_v9 = vadd.f32 %v1201_v37, %v1113_v54  ;;  %v1117_v10 = vadd.f32 %v1115_v55, %v1027_v51 }
 0x10a   : > { %v1299_v3 = vmax.f32 %v1209_v56, %v1291_v61  ;;  %v1301_v4 = vmin.f32 %v1211_v57, %v1291_v61  ;;  %v1290_v5 = vadd.f32 %v1281_v2, %v2043_v43  ;;  %v1202_v6 = vadd.f32 %v1200_v52, %v1112_v62 }
 0x10b   : > { %v1116_v7 = vadd.f32 %v1114_v63, %v1026_v53  ;;  %v1207_v16 = vadd.f32 %v1205_v14, %v1117_v10  ;;  %v1295_v17 = vmul.f32 %v1291_v61, %v1291_v61  ;;  %v1293_v18 = vadd.f32 %v1291_v61, %v1203_v9 }
 0x10c   : > { %1303 = vst [vmem:[%s2062_s14 + $0x8] sm:$0xff] %v1299_v3  ;;  %1305 = vst [vmem:[%s2066_s15 + $0x8] sm:$0xff] %v1301_v4  ;;  %v1298_v41 = vmax.f32 %v1208_v0, %v1290_v5  ;;  %v1300_v11 = vmin.f32 %v1210_v1, %v1290_v5  ;;  %v1292_v12 = vadd.f32 %v1290_v5, %v1202_v6 }
 0x10d   : > { %v1294_v43 = vmul.f32 %v1290_v5, %v1290_v5  ;;  %v1206_v13 = vadd.f32 %v1204_v8, %v1116_v7  ;;  %v1297_v19 = vadd.f32 %v1295_v17, %v1207_v16 }
 0x10e   : > { %1302 = vst [vmem:[%s2062_s14] sm:$0xff] %v1298_v41  ;;  %1304 = vst [vmem:[%s2066_s15] sm:$0xff] %v1300_v11  ;;  %1308 = vadd.xlane.f32.xlu0 %v1292_v12 }
 0x10f   : > { %v1296_v15 = vadd.f32 %v1294_v43, %v1206_v13 }
 0x111   : > { %1319 = vadd.xlane.f32.xlu1 %v1296_v15 }
 0x112   : > { %1310 = vadd.xlane.f32.xlu0 %v1293_v18 }
 0x113   : > { %v1383_v32 = vld [vmem:[%s2062_s14 + $0x8] sm:$0xff] (%p1919_p6) }
 0x114   : > { %1384 = vst [vmem:[%s1350_s21 + $0x10] sm:$0xff] (%p1919_p6), %v1383_v32 }
 0x115   : > { %1321 = vadd.xlane.f32.xlu1 %v1297_v19  ;;  %v1381_v40 = vld [vmem:[%s2062_s14] sm:$0xff] (%p1919_p6) }
 0x116   : > { %1382 = vst [vmem:[%s1350_s21] sm:$0xff] (%p1919_p6), %v1381_v40 }
 0x197   : > { %v1309_v21 = vpop.xlane.xlu0 %1308 }
 0x198   : > { %v1312_v22 = vadd.f32 %v1309_v21, %v1306_v20 }
 0x19a   : > { %1315 = vst.msk [vmem:[%s2033_s13] sm:$0xff] %vm488_vm1, %v1312_v22  ;;  %v1320_v25 = vpop.xlane.xlu1 %1319 }
 0x19b   : > { %v1323_v26 = vadd.f32 %v1320_v25, %v1317_v23  ;;  %v1311_v27 = vpop.xlane.xlu0 %1310 }
 0x19c   : > { %v1313_v28 = vadd.f32 %v1311_v27, %v1307_v24 }
 0x19d   : > { %1325 = vst.msk [vmem:[%s483_s18] sm:$0xff] %vm488_vm1, %v1323_v26  ;;  %1347 = sbr.rel (!%p1919_p6) target bundleno = 418 (0x1a2), region = 120 }
 0x19e   : > { %1316 = vst.msk [vmem:[%s2033_s13 + $0x8] sm:$0xff] %vm488_vm1, %v1313_v28  ;;  %v1322_v30 = vpop.xlane.xlu1 %1321 }
 0x19f   : > { %v1324_v31 = vadd.f32 %v1322_v30, %v1318_v29 }
 0x1a1   : > { %1326 = vst.msk [vmem:[%s483_s18 + $0x8] sm:$0xff] %vm488_vm1, %v1324_v31 }
 0x1a2 PF: > { %1390 = sbr.rel (!%p1919_p6) target bundleno = 423 (0x1a7), region = 158  ;;  %s1654_s22 = sshll.u32 (%p1919_p6), %s1829_s26, 3  ;;  %v1424_v33 = vld [vmem:[%s2066_s15] sm:$0xff] (%p1919_p6)  ;;  %v1426_v34 = vld [vmem:[%s2066_s15 + $0x8] sm:$0xff] (%p1919_p6) }
 0x1a3   : > { %s1393_s9 = scalar_lea.vmem (%p1919_p6), %s2124_s5, %s1654_s22 }
 0x1a4   : > { %1425 = vst [vmem:[%s1393_s9] sm:$0xff] (%p1919_p6), %v1424_v33  ;;  %1427 = vst [vmem:[%s1393_s9 + $0x10] sm:$0xff] (%p1919_p6), %v1426_v34 }
 0x1a7 PF: > { %s18_s28 = sadd.s32 1, %s1837_s28   ;;  %s2129_s24 = smov %s1825_s25 }
 0x1a8   : > { %p15_p12 = scmp.ge.s32.totalorder %s18_s28, 4   ;;  %s2130_s25 = smov %s1924_s12 }
 0x1a9   : > { %s2131_s26 = smov %s1833_s27  ;;  %s2132_s27 = smov %s2134_s29 }
 0x1aa   :  { %17 = sbr.rel (!%p15_p12) target bundleno = 3 (0x3), region = 278 }

</bundles_post_ra>
